<compile_context>
chip_gen: v6e
topology: v6e:2x2x1
jax: 0.10.0
libtpu: 0.0.40
codegen_flags: <defaults>
</compile_context>

<pallas_src>
import math
import jax
import jax.numpy as jnp
from jax.experimental import pallas as pl
from jax.experimental.pallas import tpu as pltpu


_NEG = -1e9  # finite additive mask (keeps fully-masked rows NaN-free)

# order of the stacked per-layer operands (must match the decoder kernel signature)
_LAYER_KEYS = ("wqkv", "bqkv", "wo", "bo", "wcr", "bcr",
               "w1", "b1", "w2", "b2",
               "g1", "be1", "g2", "be2", "g3", "be3")


def _round_up(x, m):
    return (x + m - 1) // m * m


def _pick_tile(n, candidates):
    for c in candidates:
        if n % c == 0:
            return c
    return n


# ----------------------------------------------------------------------------
# Kernel 1: frozen encoder stub + token/positional embedding (runs once).
# ----------------------------------------------------------------------------
def _embed_encode_kernel(cap_ref, img_ref, pos_ref, tok_ref,
                         enc_w_ref, enc_b_ref, encl_w_ref, encl_b_ref,
                         x_ref, mem_ref):
    f32 = jnp.float32
    BS = cap_ref.shape[0]
    Vp, D = tok_ref.shape

    # frozen CNN proxy: relu(img @ W + b) -> encoder_linear
    feat = jnp.dot(img_ref[...], enc_w_ref[...], preferred_element_type=f32) + enc_b_ref[...]
    feat = jnp.maximum(feat, 0.0)
    mem_ref[...] = (jnp.dot(feat, encl_w_ref[...], preferred_element_type=f32)
                    + encl_b_ref[...])

    # token embedding as a one-hot MXU matmul (tiny vocab only; see TODO above)
    one_hot = (cap_ref[...] ==
               jax.lax.broadcasted_iota(jnp.int32, (BS, Vp), 1)).astype(tok_ref.dtype)
    emb = jnp.dot(one_hot, tok_ref[...], preferred_element_type=f32)
    x_ref[...] = emb * math.sqrt(D) + pos_ref[...]


# ----------------------------------------------------------------------------
# Kernel 2: decoder stack. grid = (B, L): batch "parallel", layer "arbitrary".
# One post-norm TransformerDecoderLayer (relu, eval / no dropout) per step.
# ----------------------------------------------------------------------------
def _decoder_layer_kernel(
    xemb_ref,   # [1, S, D]  f32   embedded tokens for this batch element
    mem_ref,    # [1, 1, D]  f32   encoder memory (length-1)
    padb_ref,   # [1, 1, S]  f32   additive key-padding bias (0 / -1e9)
    # stacked per-layer weights (leading L axis indexed by the grid)
    wqkv_ref,   # [1, nh, D, 3*hd] bf16  fused per-head Q|K|V projection
    bqkv_ref,   # [1, nh, 1, 3*hd] f32
    wo_ref,     # [1, nh, hd, D]   bf16
    bo_ref,     # [1, 1, D]        f32
    wcr_ref,    # [1, D, D]        bf16  folded cross-attention (Wv @ Wo)
    bcr_ref,    # [1, 1, D]        f32
    w1_ref,     # [1, D, F]        bf16
    b1_ref,     # [1, 1, F]        f32
    w2_ref,     # [1, F, D]        bf16
    b2_ref,     # [1, 1, D]        f32
    g1_ref, be1_ref, g2_ref, be2_ref, g3_ref, be3_ref,   # [1, 1, D] f32
    # output
    xout_ref,   # [1, S, D]  f32
    # scratch (resident across the layer axis for this batch element)
    x_scr,      # [S, D]     f32
):
    l = pl.program_id(1)
    S, D = x_scr.shape
    nh = wqkv_ref.shape[1]
    hd = wqkv_ref.shape[3] // 3
    inv_sqrt_hd = 1.0 / math.sqrt(hd)
    f32, bf16 = jnp.float32, jnp.bfloat16

    @pl.when(l == 0)
    def _init():
        x_scr[...] = xemb_ref[0]

    x = x_scr[...]                                             # [S, D]

    def layer_norm(v, g_ref, b_ref):
        mu = jnp.mean(v, axis=-1, keepdims=True)
        c = v - mu
        var = jnp.mean(c * c, axis=-1, keepdims=True)
        return c * jax.lax.rsqrt(var + 1e-5) * g_ref[0] + b_ref[0]

    # causal + key-padding additive bias, built in-kernel (a few VPU compares
    # that hide under the MXU) instead of a precomputed HBM bias.
    row = jax.lax.broadcasted_iota(jnp.int32, (S, S), 0)
    col = jax.lax.broadcasted_iota(jnp.int32, (S, S), 1)
    bias = jnp.where(col <= row, 0.0, _NEG).astype(f32) + padb_ref[0]   # [S, S]

    # 1) masked multi-head self-attention (per-batch, head-batched einsums,
    #    single fused QKV projection).
    xb = jnp.broadcast_to(x.astype(bf16), (nh, S, D))
    qkv = jnp.einsum('nsd,nde->nse', xb, wqkv_ref[0],
                     preferred_element_type=f32) + bqkv_ref[0]          # [nh, S, 3*hd]
    q = qkv[:, :, :hd]
    k = qkv[:, :, hd:2 * hd]
    v = qkv[:, :, 2 * hd:]

    s = jnp.einsum('nqh,nkh->nqk', q.astype(bf16), k.astype(bf16),
                   preferred_element_type=f32) * inv_sqrt_hd + bias     # [nh, S, S]
    s = s - jnp.max(s, axis=-1, keepdims=True)
    p = jnp.exp(s)
    p = p * pl.reciprocal(jnp.sum(p, axis=-1, keepdims=True), approx=True)
    ctx = jnp.einsum('nqk,nkh->nqh', p.astype(bf16), v.astype(bf16),
                     preferred_element_type=f32)                        # [nh, S, hd]
    sa = jnp.sum(jnp.einsum('nqh,nhd->nqd', ctx.astype(bf16), wo_ref[0],
                            preferred_element_type=f32), axis=0) + bo_ref[0]
    x1 = layer_norm(x + sa, g1_ref, be1_ref)

    # 2) cross-attention over the length-1 encoder memory: softmax over a single
    #    key is exactly 1 -> (mem @ Wv + bv) @ Wo + bo, pre-folded; broadcast
    #    over the S query rows (no selector matmul).
    ca_row = (jnp.dot(mem_ref[0].astype(bf16), wcr_ref[0],
                      preferred_element_type=f32) + bcr_ref[0])         # [1, D]
    x2 = layer_norm(x1 + ca_row, g2_ref, be2_ref)

    # 3) feed-forward (relu)
    h = jnp.maximum(jnp.dot(x2.astype(bf16), w1_ref[0],
                            preferred_element_type=f32) + b1_ref[0], 0.0)
    ff = jnp.dot(h.astype(bf16), w2_ref[0], preferred_element_type=f32) + b2_ref[0]
    x3 = layer_norm(x2 + ff, g3_ref, be3_ref)

    x_scr[...] = x3
    xout_ref[...] = x3[None]


# ----------------------------------------------------------------------------
# Kernel 3: vocab projection, tiled over (BS, Vp).
# ----------------------------------------------------------------------------
def _vocab_proj_kernel(x_ref, w_ref, b_ref, o_ref):
    o_ref[...] = (jnp.dot(x_ref[...].astype(jnp.bfloat16), w_ref[...],
                          preferred_element_type=jnp.float32) + b_ref[...])


# ----------------------------------------------------------------------------
# BlockSpec helpers for the decoder call (grid = (B, L))
# ----------------------------------------------------------------------------
def _batch_spec(arr):
    nd = arr.ndim
    return pl.BlockSpec((1,) + arr.shape[1:],
                        lambda b, l, _n=nd: (b,) + (0,) * (_n - 1))


def _layer_spec(arr):
    nd = arr.ndim
    return pl.BlockSpec((1,) + arr.shape[1:],
                        lambda b, l, _n=nd: (l,) + (0,) * (_n - 1))


# ----------------------------------------------------------------------------
# Parameter init (PyTorch [out, in] convention) and one-time TPU prep
# ----------------------------------------------------------------------------
def init_params(key, *, image_size, vocab_size, max_seq_length,
                num_decoder_layers, n_head, d_model, fc_dim, enc_feat):
    def dense(k, out_dim, in_dim, s=0.02):
        return (jax.random.normal(k, (out_dim, in_dim), jnp.float32) * s,
                jnp.zeros((out_dim,), jnp.float32))

    keys = iter(jax.random.split(key, 8 + 12 * num_decoder_layers))
    p = {}
    in_pixels = 3 * image_size * image_size
    p["enc_w"], p["enc_b"] = dense(next(keys), enc_feat, in_pixels)      # frozen encoder proxy
    p["enc_lin_w"], p["enc_lin_b"] = dense(next(keys), d_model, enc_feat)
    p["tok_emb"] = jax.random.normal(next(keys), (vocab_size, d_model), jnp.float32) * 0.02
    p["pos_emb"] = jax.random.normal(next(keys), (max_seq_length, d_model), jnp.float32) * 0.02
    p["out_w"], p["out_b"] = dense(next(keys), vocab_size, d_model)

    layers = []
    for _ in range(num_decoder_layers):
        lp = {}
        for pre in ("s", "c"):
            for nm in ("q", "k", "v", "o"):
                w, b = dense(next(keys), d_model, d_model)
                lp[f"w{nm}_{pre}"], lp[f"b{nm}_{pre}"] = w, b
        lp["w1"], lp["b1"] = dense(next(keys), fc_dim, d_model)
        lp["w2"], lp["b2"] = dense(next(keys), d_model, fc_dim)
        for i in (1, 2, 3):
            lp[f"g{i}"] = jnp.ones((d_model,), jnp.float32)
            lp[f"be{i}"] = jnp.zeros((d_model,), jnp.float32)
        layers.append(lp)
    p["layers"] = layers
    return p


def prepare_params(p, *, n_head):
    """One-time weight prep: transpose to [in, out], fuse per-head Q|K|V into a
    single [nh, D, 3*hd] projection, fold the length-1 cross-attention, cast
    matmul weights to bf16, zero-pad the vocab dim to a 128-lane multiple and
    stack per-layer weights along a leading L axis."""
    V, D = p["tok_emb"].shape
    hd = D // n_head
    Vp = _round_up(V, 128)
    bf16 = jnp.bfloat16

    prep = {
        "d_model": D, "vocab_size": V, "n_head": n_head,
        "enc_w": p["enc_w"].T, "enc_b": p["enc_b"][None, :],
        "encl_w": p["enc_lin_w"].T, "encl_b": p["enc_lin_b"][None, :],
        "tok_emb": jnp.zeros((Vp, D), bf16).at[:V].set(p["tok_emb"].astype(bf16)),
        "pos_emb": p["pos_emb"],
        "out_w": jnp.zeros((D, Vp), bf16).at[:, :V].set(p["out_w"].T.astype(bf16)),
        "out_b": jnp.zeros((1, Vp), jnp.float32).at[:, :V].set(p["out_b"][None, :]),
    }

    def split_heads_in(w):    # torch [D_out, D_in] -> [nh, D_in, hd]
        return w.T.reshape(D, n_head, hd).transpose(1, 0, 2)

    stacked = {k: [] for k in _LAYER_KEYS}
    for lp in p["layers"]:
        wq, wk, wv = (split_heads_in(lp["wq_s"]), split_heads_in(lp["wk_s"]),
                      split_heads_in(lp["wv_s"]))
        stacked["wqkv"].append(jnp.concatenate([wq, wk, wv], axis=-1).astype(bf16))
        stacked["bqkv"].append(jnp.concatenate(
            [lp["bq_s"].reshape(n_head, 1, hd),
             lp["bk_s"].reshape(n_head, 1, hd),
             lp["bv_s"].reshape(n_head, 1, hd)], axis=-1))
        stacked["wo"].append(lp["wo_s"].T.reshape(n_head, hd, D).astype(bf16))
        stacked["bo"].append(lp["bo_s"][None, :])
        # cross-attn over one memory token: attn == (mem @ WvT + bv) @ WoT + bo
        wv_t, wo_t = lp["wv_c"].T, lp["wo_c"].T
        stacked["wcr"].append((wv_t @ wo_t).astype(bf16))
        stacked["bcr"].append(lp["bv_c"][None, :] @ wo_t + lp["bo_c"][None, :])
        stacked["w1"].append(lp["w1"].T.astype(bf16))
        stacked["b1"].append(lp["b1"][None, :])
        stacked["w2"].append(lp["w2"].T.astype(bf16))
        stacked["b2"].append(lp["b2"][None, :])
        for i in (1, 2, 3):
            stacked[f"g{i}"].append(lp[f"g{i}"][None, :])
            stacked[f"be{i}"].append(lp[f"be{i}"][None, :])
    for k, vals in stacked.items():
        prep[k] = jnp.stack(vals, axis=0)
    return prep


# ----------------------------------------------------------------------------
# Forward pass: three pallas_calls (embed/encode -> decoder stack -> vocab proj)
# ----------------------------------------------------------------------------
def image_captioning_forward(prep, image, caption, target_pad_mask):
    B, S = caption.shape
    D, V = prep["d_model"], prep["vocab_size"]
    Vp = prep["tok_emb"].shape[0]
    BS = B * S
    L = prep["wqkv"].shape[0]
    f32 = jnp.float32

    img_flat = image.reshape(B, -1).astype(f32)
    cap_col = caption.reshape(BS, 1).astype(jnp.int32)
    pos_slab = jnp.tile(prep["pos_emb"][:S], (B, 1))                     # [BS, D]
    padbias = jnp.where(target_pad_mask, _NEG, 0.0).astype(f32).reshape(B, 1, S)

    # --- call 1: encoder stub + embedding --------------------------------
    x_emb2d, mem2d = pl.pallas_call(
        _embed_encode_kernel,
        out_shape=(jax.ShapeDtypeStruct((BS, D), f32),
                   jax.ShapeDtypeStruct((B, D), f32)),
    )(cap_col, img_flat, pos_slab, prep["tok_emb"],
      prep["enc_w"], prep["enc_b"], prep["encl_w"], prep["encl_b"])

    x_emb = x_emb2d.reshape(B, S, D)
    mem = mem2d.reshape(B, 1, D)

    # --- call 2: decoder stack (grid = (B, L)) ----------------------------
    layer_inputs = [prep[k] for k in _LAYER_KEYS]
    x_dec = pl.pallas_call(
        _decoder_layer_kernel,
        out_shape=jax.ShapeDtypeStruct((B, S, D), f32),
        grid=(B, L),
        in_specs=[_batch_spec(x_emb), _batch_spec(mem), _batch_spec(padbias)]
                 + [_layer_spec(a) for a in layer_inputs],
        out_specs=pl.BlockSpec((1, S, D), lambda b, l: (b, 0, 0)),
        scratch_shapes=[pltpu.VMEM((S, D), jnp.float32)],
        compiler_params=pltpu.CompilerParams(
            dimension_semantics=("parallel", "arbitrary"),
            vmem_limit_bytes=32 * 1024 * 1024),
    )(x_emb, mem, padbias, *layer_inputs)

    # --- call 3: vocab projection, tiled over (BS, Vp) ---------------------
    x2d = x_dec.reshape(BS, D)
    TM = _pick_tile(BS, (256, 128, 64, 32, 16, 8))
    TN = _pick_tile(Vp, (512, 256, 128))
    logits_pad = pl.pallas_call(
        _vocab_proj_kernel,
        out_shape=jax.ShapeDtypeStruct((BS, Vp), f32),
        grid=(BS // TM, Vp // TN),
        in_specs=[pl.BlockSpec((TM, D), lambda i, j: (i, 0)),
                  pl.BlockSpec((D, TN), lambda i, j: (0, j)),
                  pl.BlockSpec((1, TN), lambda i, j: (0, j))],
        out_specs=pl.BlockSpec((TM, TN), lambda i, j: (i, j)),
        compiler_params=pltpu.CompilerParams(
            dimension_semantics=("parallel", "parallel"),
            vmem_limit_bytes=32 * 1024 * 1024),
    )(x2d, prep["out_w"], prep["out_b"])

    logits = logits_pad[:, :V].reshape(B, S, V)
    return logits, None


# ----------------------------------------------------------------------------
if __name__ == "__main__":
    B = 2
    image_size = 16
    vocab_size = 50
    max_seq_length = 16
    seq_len = 8
    num_decoder_layers = 2
    n_head = 4
    d_model = 32
    fc_dim = 64
    enc_feat = 64

    key = jax.random.PRNGKey(0)
    k_param, k_img, k_cap = jax.random.split(key, 3)

    params = init_params(
        k_param, image_size=image_size, vocab_size=vocab_size,
        max_seq_length=max_seq_length, num_decoder_layers=num_decoder_layers,
        n_head=n_head, d_model=d_model, fc_dim=fc_dim, enc_feat=enc_feat)
    prep = prepare_params(params, n_head=n_head)

    image = jax.random.normal(k_img, (B, 3, image_size, image_size), jnp.float32)
    caption = jax.random.randint(k_cap, (B, seq_len), 0, vocab_size, jnp.int32)
    target_pad_mask = jnp.array(
        [[False, False, False, False, False, False, True, True],
         [False, False, False, False, False, False, False, False]])

    logits, _ = image_captioning_forward(prep, image, caption, target_pad_mask)
    logits = jax.block_until_ready(logits)
    assert logits.shape == (B, seq_len, vocab_size)
    assert bool(jnp.all(jnp.isfinite(logits)))
    print("KERNEL_OK")
</pallas_src>

<mosaic_0001>
module attributes {stable_mosaic.version = 11 : i64} {
  func.func @_embed_encode_kernel(%arg0: memref<16x1xi32, #tpu.memory_space<vmem>>, %arg1: memref<2x768xf32, #tpu.memory_space<vmem>>, %arg2: memref<16x32xf32, #tpu.memory_space<vmem>>, %arg3: memref<128x32xbf16, #tpu.memory_space<vmem>>, %arg4: memref<768x64xf32, #tpu.memory_space<vmem>>, %arg5: memref<1x64xf32, #tpu.memory_space<vmem>>, %arg6: memref<64x32xf32, #tpu.memory_space<vmem>>, %arg7: memref<1x32xf32, #tpu.memory_space<vmem>>, %arg8: memref<16x32xf32, #tpu.memory_space<vmem>>, %arg9: memref<2x32xf32, #tpu.memory_space<vmem>>) attributes {dimension_semantics = [], scalar_prefetch = 0 : i64, scratch_operands = 0 : i64, tpu.core_type = #tpu.core_type<tc>} {
    %c0 = arith.constant 0 : index
    %c0_0 = arith.constant 0 : index
    %0 = vector.load %arg1[%c0, %c0_0] : memref<2x768xf32, #tpu.memory_space<vmem>>, vector<2x768xf32>
    %c0_1 = arith.constant 0 : index
    %c0_2 = arith.constant 0 : index
    %1 = vector.load %arg4[%c0_1, %c0_2] : memref<768x64xf32, #tpu.memory_space<vmem>>, vector<768x64xf32>
    %cst = arith.constant dense<0.000000e+00> : vector<2x64xf32>
    %2 = tpu.matmul %0, %1, %cst {dimension_numbers = #tpu.dot_dimension_numbers<[1], [0], [0], [1], [0, 0, 1, 1], [], []>} : vector<2x768xf32>, vector<768x64xf32>, vector<2x64xf32> -> vector<2x64xf32>
    %c0_3 = arith.constant 0 : index
    %c0_4 = arith.constant 0 : index
    %3 = vector.load %arg5[%c0_3, %c0_4] : memref<1x64xf32, #tpu.memory_space<vmem>>, vector<1x64xf32>
    %4 = vector.broadcast %3 : vector<1x64xf32> to vector<2x64xf32>
    %5 = arith.addf %2, %4 : vector<2x64xf32>
    %cst_5 = arith.constant 0.000000e+00 : f32
    %6 = vector.broadcast %cst_5 : f32 to vector<2x64xf32>
    %7 = arith.maximumf %5, %6 : vector<2x64xf32>
    %c0_6 = arith.constant 0 : index
    %c0_7 = arith.constant 0 : index
    %8 = vector.load %arg6[%c0_6, %c0_7] : memref<64x32xf32, #tpu.memory_space<vmem>>, vector<64x32xf32>
    %cst_8 = arith.constant dense<0.000000e+00> : vector<2x32xf32>
    %9 = tpu.matmul %7, %8, %cst_8 {dimension_numbers = #tpu.dot_dimension_numbers<[1], [0], [0], [1], [0, 0, 1, 1], [], []>} : vector<2x64xf32>, vector<64x32xf32>, vector<2x32xf32> -> vector<2x32xf32>
    %c0_9 = arith.constant 0 : index
    %c0_10 = arith.constant 0 : index
    %10 = vector.load %arg7[%c0_9, %c0_10] : memref<1x32xf32, #tpu.memory_space<vmem>>, vector<1x32xf32>
    %11 = vector.broadcast %10 : vector<1x32xf32> to vector<2x32xf32>
    %12 = arith.addf %9, %11 : vector<2x32xf32>
    %c0_11 = arith.constant 0 : index
    %c0_12 = arith.constant 0 : index
    %13 = vector.load %arg9[%c0_11, %c0_12] : memref<2x32xf32, #tpu.memory_space<vmem>>, vector<2x32xf32>
    tpu.vector_store %arg9[%c0_11, %c0_12], %12 {strides = array<i32>} : memref<2x32xf32, #tpu.memory_space<vmem>>, vector<2x32xf32>,
    %c0_13 = arith.constant 0 : index
    %c0_14 = arith.constant 0 : index
    %14 = vector.load %arg0[%c0_13, %c0_14] : memref<16x1xi32, #tpu.memory_space<vmem>>, vector<16x1xi32>
    %15 = tpu.iota {dimensions = array<i32: 1>} : vector<16x128xi32>
    %16 = vector.broadcast %14 : vector<16x1xi32> to vector<16x128xi32>
    %17 = arith.cmpi eq, %16, %15 : vector<16x128xi32>
    %18 = arith.extui %17 : vector<16x128xi1> to vector<16x128xi32>
    %19 = arith.sitofp %18 : vector<16x128xi32> to vector<16x128xf32>
    %20 = arith.truncf %19 : vector<16x128xf32> to vector<16x128xbf16>
    %c0_15 = arith.constant 0 : index
    %c0_16 = arith.constant 0 : index
    %21 = vector.load %arg3[%c0_15, %c0_16] : memref<128x32xbf16, #tpu.memory_space<vmem>>, vector<128x32xbf16>
    %cst_17 = arith.constant dense<0.000000e+00> : vector<16x32xf32>
    %22 = tpu.matmul %20, %21, %cst_17 {dimension_numbers = #tpu.dot_dimension_numbers<[1], [0], [0], [1], [0, 0, 1, 1], [], []>} : vector<16x128xbf16>, vector<128x32xbf16>, vector<16x32xf32> -> vector<16x32xf32>
    %cst_18 = arith.constant 5.65685415 : f32
    %23 = vector.broadcast %cst_18 : f32 to vector<16x32xf32>
    %24 = arith.mulf %22, %23 : vector<16x32xf32>
    %c0_19 = arith.constant 0 : index
    %c0_20 = arith.constant 0 : index
    %25 = vector.load %arg2[%c0_19, %c0_20] : memref<16x32xf32, #tpu.memory_space<vmem>>, vector<16x32xf32>
    %26 = arith.addf %24, %25 : vector<16x32xf32>
    %c0_21 = arith.constant 0 : index
    %c0_22 = arith.constant 0 : index
    %27 = vector.load %arg8[%c0_21, %c0_22] : memref<16x32xf32, #tpu.memory_space<vmem>>, vector<16x32xf32>
    tpu.vector_store %arg8[%c0_21, %c0_22], %26 {strides = array<i32>} : memref<16x32xf32, #tpu.memory_space<vmem>>, vector<16x32xf32>,
    return
  }
}

</mosaic_0001>

<bundles_post_ra>
// kernel: tpu_custom_call.1
= control target key start
LH: loop header
LB: loop body
LE: loop exit
PB: predicated region body
PF: predicated region fallthrough
CT: control target
= control target key end

     0   :  { %15 = vsyncpa [#allocation3], 0  ;;  %v876_v6 = vmov 0   ;;  %v877_v28 = vmov 1983009808   ;;  %v145_v30 = vlaneseq  ;;  %s1326_s0 = inlined_call_operand.vmem [shape: s32[16,1], index: 0, kind: input, shape index: {}]   ;;  %s1327_s1 = inlined_call_operand.vmem [shape: f32[2,768], index: 1, kind: input, shape index: {}]   ;;  %s1328_s2 = inlined_call_operand.vmem [shape: f32[16,32], index: 2, kind: input, shape index: {}]   ;;  %s1329_s3 = inlined_call_operand.vmem [shape: bf16[128,32], index: 3, kind: input, shape index: {}]   ;;  %s1330_s4 = inlined_call_operand.vmem [shape: f32[768,64], index: 4, kind: input, shape index: {}]   ;;  %s1331_s5 = inlined_call_operand.vmem [shape: f32[1,64], index: 5, kind: input, shape index: {}]   ;;  %s1332_s6 = inlined_call_operand.vmem [shape: f32[64,32], index: 6, kind: input, shape index: {}]   ;;  %s1333_s7 = inlined_call_operand.vmem [shape: f32[1,32], index: 7, kind: input, shape index: {}]   ;;  %s1334_s8 = inlined_call_operand.hbm [shape: f32[16,32], index: 8, kind: output, shape index: {0}]   ;;  %s1335_s9 = inlined_call_operand.hbm [shape: f32[2,32], index: 9, kind: output, shape index: {1}]  }
   0x1   :  { %v67_v0 = vld [vmem:[%s1330_s4 + $0xf8] sm:$0xff]  ;;  %v66_v2 = vld [vmem:[%s1330_s4 + $0xf0] sm:$0xff]  ;;  %822 = vset.pattern.permute.xlu0 %v876_v6  ;;  %v65_v7 = vld [vmem:[%s1330_s4 + $0xe8] sm:$0xff]  ;;  %v143_v29 = vunpack.c.l.s4 %v877_v28 }
   0x2   :  { %v51_v1 = vld [vmem:[%s1330_s4 + $0x78] sm:$0xff]  ;;  %651 = vmatprep.subr.mxu0 %v67_v0  ;;  %v50_v4 = vld [vmem:[%s1330_s4 + $0x70] sm:$0xff]  ;;  %v49_v9 = vld [vmem:[%s1330_s4 + $0x68] sm:$0xff]  ;;  %v146_v40 = vshrl.u32 %v145_v30, 7 }
   0x3   :  { %v99_v3 = vld [vmem:[%s1330_s4 + $0x1f8] sm:$0xff]  ;;  %652 = vmatpush3.msra.mxu0 %v51_v1  ;;  %v98_v8 = vld [vmem:[%s1330_s4 + $0x1f0] sm:$0xff]  ;;  %v97_v11 = vld [vmem:[%s1330_s4 + $0x1e8] sm:$0xff]  ;;  %v144_v39 = vunpack.c.0.s8 %v143_v29 }
   0x4   :  { %v83_v5 = vld [vmem:[%s1330_s4 + $0x178] sm:$0xff]  ;;  %686 = vmatprep.subr.mxu1 %v99_v3  ;;  %653 = vmatprep.subr.mxu0 %v66_v2  ;;  %v82_v10 = vld [vmem:[%s1330_s4 + $0x170] sm:$0xff]  ;;  %v64_v12 = vld [vmem:[%s1330_s4 + $0xe0] sm:$0xff] }
   0x5   :  { %687 = vmatpush3.msra.mxu1 %v83_v5  ;;  %654 = vmatpush3.msra.mxu0 %v50_v4  ;;  %v81_v13 = vld [vmem:[%s1330_s4 + $0x168] sm:$0xff]  ;;  %v48_v14 = vld [vmem:[%s1330_s4 + $0x60] sm:$0xff]  ;;  %v63_v16 = vld [vmem:[%s1330_s4 + $0xd8] sm:$0xff]  ;;  %v147_v49 = vsub.s32 %v144_v39, %v146_v40 }
   0x6   :  { %688 = vmatprep.subr.mxu1 %v98_v8  ;;  %655 = vmatprep.subr.mxu0 %v65_v7  ;;  %v96_v15 = vld [vmem:[%s1330_s4 + $0x1e0] sm:$0xff]  ;;  %v47_v18 = vld [vmem:[%s1330_s4 + $0x58] sm:$0xff]  ;;  %v62_v20 = vld [vmem:[%s1330_s4 + $0xd0] sm:$0xff] }
   0x7   :  { %689 = vmatpush3.msra.mxu1 %v82_v10  ;;  %656 = vmatpush3.msra.mxu0 %v49_v9  ;;  %v80_v17 = vld [vmem:[%s1330_s4 + $0x160] sm:$0xff]  ;;  %v95_v19 = vld [vmem:[%s1330_s4 + $0x1d8] sm:$0xff]  ;;  %v46_v22 = vld [vmem:[%s1330_s4 + $0x50] sm:$0xff] }
   0x8   :  { %690 = vmatprep.subr.mxu1 %v97_v11  ;;  %657 = vmatprep.subr.mxu0 %v64_v12  ;;  %v79_v21 = vld [vmem:[%s1330_s4 + $0x158] sm:$0xff]  ;;  %v94_v23 = vld [vmem:[%s1330_s4 + $0x1d0] sm:$0xff]  ;;  %v61_v24 = vld [vmem:[%s1330_s4 + $0xc8] sm:$0xff] }
   0x9   :  { %691 = vmatpush3.msra.mxu1 %v81_v13  ;;  %658 = vmatpush3.msra.mxu0 %v48_v14  ;;  %v78_v25 = vld [vmem:[%s1330_s4 + $0x150] sm:$0xff]  ;;  %v45_v26 = vld [vmem:[%s1330_s4 + $0x48] sm:$0xff]  ;;  %v60_v31 = vld [vmem:[%s1330_s4 + $0xc0] sm:$0xff] }
   0xa   :  { %692 = vmatprep.subr.mxu1 %v96_v15  ;;  %659 = vmatprep.subr.mxu0 %v63_v16  ;;  %v93_v27 = vld [vmem:[%s1330_s4 + $0x1c8] sm:$0xff]  ;;  %v44_v33 = vld [vmem:[%s1330_s4 + $0x40] sm:$0xff]  ;;  %v59_v35 = vld [vmem:[%s1330_s4 + $0xb8] sm:$0xff] }
   0xb   :  { %693 = vmatpush3.msra.mxu1 %v80_v17  ;;  %660 = vmatpush3.msra.mxu0 %v47_v18  ;;  %v77_v32 = vld [vmem:[%s1330_s4 + $0x148] sm:$0xff]  ;;  %v92_v34 = vld [vmem:[%s1330_s4 + $0x1c0] sm:$0xff]  ;;  %v43_v37 = vld [vmem:[%s1330_s4 + $0x38] sm:$0xff] }
   0xc   :  { %694 = vmatprep.subr.mxu1 %v95_v19  ;;  %661 = vmatprep.subr.mxu0 %v62_v20  ;;  %v76_v36 = vld [vmem:[%s1330_s4 + $0x140] sm:$0xff]  ;;  %v91_v38 = vld [vmem:[%s1330_s4 + $0x1b8] sm:$0xff]  ;;  %v58_v41 = vld [vmem:[%s1330_s4 + $0xb0] sm:$0xff] }
   0xd   :  { %695 = vmatpush3.msra.mxu1 %v79_v21  ;;  %662 = vmatpush3.msra.mxu0 %v46_v22  ;;  %v75_v42 = vld [vmem:[%s1330_s4 + $0x138] sm:$0xff]  ;;  %v42_v43 = vld [vmem:[%s1330_s4 + $0x30] sm:$0xff]  ;;  %v57_v45 = vld [vmem:[%s1330_s4 + $0xa8] sm:$0xff] }
   0xe   :  { %696 = vmatprep.subr.mxu1 %v94_v23  ;;  %663 = vmatprep.subr.mxu0 %v61_v24  ;;  %v90_v44 = vld [vmem:[%s1330_s4 + $0x1b0] sm:$0xff]  ;;  %v41_v47 = vld [vmem:[%s1330_s4 + $0x28] sm:$0xff]  ;;  %v56_v50 = vld [vmem:[%s1330_s4 + $0xa0] sm:$0xff] }
   0xf   :  { %697 = vmatpush3.msra.mxu1 %v78_v25  ;;  %664 = vmatpush3.msra.mxu0 %v45_v26  ;;  %v74_v46 = vld [vmem:[%s1330_s4 + $0x130] sm:$0xff]  ;;  %v89_v48 = vld [vmem:[%s1330_s4 + $0x1a8] sm:$0xff]  ;;  %v34_v52 = vld [vmem:[%s1327_s1] sm:$0xff] }
  0x10   :  { %698 = vmatprep.subr.mxu1 %v93_v27  ;;  %665 = vmatprep.subr.mxu0 %v60_v31  ;;  %v73_v51 = vld [vmem:[%s1330_s4 + $0x128] sm:$0xff]  ;;  %v40_v53 = vld [vmem:[%s1330_s4 + $0x20] sm:$0xff]  ;;  %v55_v55 = vld [vmem:[%s1330_s4 + $0x98] sm:$0xff]  ;;  %v148_v59 = vrot.slane %v34_v52, %v147_v49  ;;  %v141_v60 = vcombine.high %v34_v52, %v34_v52  ;;  %v878_v27 = vmov 0.0  }
  0x11   :  { %699 = vmatpush3.msra.mxu1 %v77_v32  ;;  %666 = vmatpush3.msra.mxu0 %v44_v33  ;;  %v88_v54 = vld [vmem:[%s1330_s4 + $0x1a0] sm:$0xff]  ;;  %v39_v57 = vld [vmem:[%s1330_s4 + $0x18] sm:$0xff]  ;;  %v54_v61 = vld [vmem:[%s1330_s4 + $0x90] sm:$0xff] }
  0x12   :  { %700 = vmatprep.subr.mxu1 %v92_v34  ;;  %667 = vmatprep.subr.mxu0 %v59_v35  ;;  %v72_v56 = vld [vmem:[%s1330_s4 + $0x120] sm:$0xff]  ;;  %v87_v58 = vld [vmem:[%s1330_s4 + $0x198] sm:$0xff]  ;;  %v38_v63 = vld [vmem:[%s1330_s4 + $0x10] sm:$0xff]  ;;  %v156_v5 = vcombine.high %v148_v59, %v148_v59  ;;  %v155_v6 = vrot.slane %v141_v60, %v147_v49 }
  0x13   :  { %701 = vmatpush3.msra.mxu1 %v76_v36  ;;  %668 = vmatpush3.msra.mxu0 %v43_v37  ;;  %v71_v62 = vld [vmem:[%s1330_s4 + $0x118] sm:$0xff]  ;;  %v86_v0 = vld [vmem:[%s1330_s4 + $0x190] sm:$0xff]  ;;  %v53_v1 = vld [vmem:[%s1330_s4 + $0x88] sm:$0xff] }
  0x14   :  { %702 = vmatprep.subr.mxu1 %v91_v38  ;;  %669 = vmatprep.subr.mxu0 %v58_v41  ;;  %v70_v2 = vld [vmem:[%s1330_s4 + $0x110] sm:$0xff]  ;;  %v37_v3 = vld [vmem:[%s1330_s4 + $0x8] sm:$0xff]  ;;  %v52_v7 = vld [vmem:[%s1330_s4 + $0x80] sm:$0xff]  ;;  %v157_v13 = vcombine.high %v155_v6, %v155_v6 }
  0x15   :  { %703 = vmatpush3.msra.mxu1 %v75_v42  ;;  %670 = vmatpush3.msra.mxu0 %v42_v43  ;;  %v85_v4 = vld [vmem:[%s1330_s4 + $0x188] sm:$0xff]  ;;  %v36_v8 = vld [vmem:[%s1330_s4] sm:$0xff]  ;;  %v131_v11 = vld [vmem:[%s1330_s4 + $0x2f8] sm:$0xff] }
  0x16   :  { %704 = vmatprep.subr.mxu1 %v90_v44  ;;  %671 = vmatprep.subr.mxu0 %v57_v45  ;;  %v69_v9 = vld [vmem:[%s1330_s4 + $0x108] sm:$0xff]  ;;  %v84_v10 = vld [vmem:[%s1330_s4 + $0x180] sm:$0xff]  ;;  %v115_v14 = vld [vmem:[%s1330_s4 + $0x278] sm:$0xff] }
  0x17   :  { %705 = vmatpush3.msra.mxu1 %v74_v46  ;;  %672 = vmatpush3.msra.mxu0 %v41_v47  ;;  %v68_v12 = vld [vmem:[%s1330_s4 + $0x100] sm:$0xff]  ;;  %v130_v15 = vld [vmem:[%s1330_s4 + $0x2f0] sm:$0xff]  ;;  %v1146_v17 = vld.sshfl [vmem:[%s1327_s1 + $0x8] sm:$0x33 pattern:$0x76325410] }
  0x18   :  { %706 = vmatprep.subr.mxu1 %v89_v48  ;;  %673 = vmatprep.subr.mxu0 %v56_v50  ;;  %v114_v16 = vld [vmem:[%s1330_s4 + $0x270] sm:$0xff]  ;;  %v129_v18 = vld [vmem:[%s1330_s4 + $0x2e8] sm:$0xff]  ;;  %v165_v19 = vcombine.high %v1146_v17, %v1146_v17  ;;  %v474_v21 = vld [vmem:[%s1326_s0] sm:$0xff] }
  0x19   :  { %707 = vmatpush3.msra.mxu1 %v73_v51  ;;  %674 = vmatpush3.msra.mxu0 %v40_v53  ;;  %v113_v20 = vld [vmem:[%s1330_s4 + $0x268] sm:$0xff]  ;;  %v128_v22 = vld [vmem:[%s1330_s4 + $0x2e0] sm:$0xff]  ;;  %v824_v23 = vld [vmem:[%s1329_s3 + $0x38] sm:$0xff]  }
  0x1a   :  { %708 = vmatprep.subr.mxu1 %v88_v54  ;;  %675 = vmatprep.subr.mxu0 %v55_v55  ;;  %v112_v24 = vld [vmem:[%s1330_s4 + $0x260] sm:$0xff]  ;;  %v127_v25 = vld [vmem:[%s1330_s4 + $0x2d8] sm:$0xff]  ;;  %v475_v26 = vld [vmem:[%s1326_s0 + $0x8] sm:$0xff] }
  0x1b   :  { %709 = vmatpush3.msra.mxu1 %v72_v56  ;;  %676 = vmatpush3.msra.mxu0 %v39_v57 }
  0x1c   :  { %710 = vmatprep.subr.mxu1 %v87_v58  ;;  %677 = vmatprep.subr.mxu0 %v54_v61 }
  0x1d   :  { %711 = vmatpush3.msra.mxu1 %v71_v62  ;;  %678 = vmatpush3.msra.mxu0 %v38_v63 }
  0x1e   :  { %712 = vmatprep.subr.mxu1 %v86_v0  ;;  %679 = vmatprep.subr.mxu0 %v53_v1 }
  0x1f   :  { %713 = vmatpush3.msra.mxu1 %v70_v2  ;;  %680 = vmatpush3.msra.mxu0 %v37_v3 }
  0x20   :  { %714 = vmatprep.subr.mxu1 %v85_v4  ;;  %681 = vmatprep.subr.mxu0 %v52_v7 }
  0x21   :  { %236 = vmatprep.mubr.f32.mxu0 %v156_v5  ;;  %682 = vmatpush3.msra.mxu0 %v36_v8 }
  0x22   :  { %715 = vmatpush3.msra.mxu1 %v69_v9  ;;  %237 = vmatmul.mubr.f32.vlgmr.msra.gmra.mxu0 %v148_v59 }
  0x23   :  { %716 = vmatprep.subr.mxu1 %v84_v10  ;;  %721 = vmatprep.subr.mxu0 %v131_v11 }
  0x24   :  { %717 = vmatpush3.msra.mxu1 %v68_v12  ;;  %306 = vmatprep.mubr.f32.mxu1 %v157_v13 }
  0x25   :  { %722 = vmatpush3.msra.mxu0 %v115_v14  ;;  %307 = vmatmul.mubr.f32.vlgmr.msra.gmra.mxu1 %v155_v6 }
  0x26   :  { %723 = vmatprep.subr.mxu0 %v130_v15  ;;  %376 = vmatprep.mubr.f32.mxu0 %v165_v19 }
  0x27   :  { %724 = vmatpush3.msra.mxu0 %v114_v16  ;;  %479 = vperm.xlu0 %822, %v474_v21  }
  0x28   :  { %725 = vmatprep.subr.mxu0 %v129_v18  ;;  %793 = vmatprep.subr.bf16.mxu1 %v878_v27 }
  0x29   :  { %726 = vmatpush3.msra.mxu0 %v113_v20 }
  0x2a   :  { %16 = vsyncpa [#allocation5], 0  ;;  %727 = vmatprep.subr.mxu0 %v128_v22  ;;  %v111_v28 = vld [vmem:[%s1330_s4 + $0x258] sm:$0xff]  ;;  %794 = vmatpush3.bf16.msra.mxu1 %v824_v23  ;;  %v825_v29 = vld [vmem:[%s1329_s3 + $0x30] sm:$0xff]   ;;  %vm879_vm0 = vmmov 0   ;;  %v477_v3 = vand.u32 127, %v145_v30 }
  0x2b   :  { %728 = vmatpush3.msra.mxu0 %v112_v24  ;;  %v126_v31 = vld [vmem:[%s1330_s4 + $0x2d0] sm:$0xff]  ;;  %795 = vmatprep.subr.bf16.mxu1 %v878_v27  ;;  %v125_v33 = vld [vmem:[%s1330_s4 + $0x2c8] sm:$0xff]  ;;  %v124_v35 = vld [vmem:[%s1330_s4 + $0x2c0] sm:$0xff]  ;;  %v880_v6 = vmov 1.0|1.0   ;;  %vm398_vm4 = vcmask 523264  }
  0x2c   :  { %729 = vmatprep.subr.mxu0 %v127_v25  ;;  %v110_v32 = vld [vmem:[%s1330_s4 + $0x250] sm:$0xff]  ;;  %482 = vperm.xlu0 %822, %v475_v26   ;;  %v109_v34 = vld [vmem:[%s1330_s4 + $0x248] sm:$0xff]  ;;  %v108_v36 = vld [vmem:[%s1330_s4 + $0x240] sm:$0xff]  ;;  %vm602_vm5 = vcmask 261120   ;;  %s881_s24 = smov [#allocation2]  }
  0x2d   :  { %730 = vmatpush3.msra.mxu0 %v111_v28  ;;  %v123_v37 = vld [vmem:[%s1330_s4 + $0x2b8] sm:$0xff]  ;;  %v122_v39 = vld [vmem:[%s1330_s4 + $0x2b0] sm:$0xff]  ;;  %v121_v41 = vld [vmem:[%s1330_s4 + $0x2a8] sm:$0xff]  ;;  %809 = vmatprep.mubr.msk.bf16.mxu1 %vm879_vm0, %v878_v27  ;;  %s610_s25 = sshll.u32 %s881_s24, 4  ;;  %s611_s25 = int_to_ptr.vmem [resolvable:$true] %s610_s25 }
  0x2e   :  { %731 = vmatprep.subr.mxu0 %v126_v31  ;;  %796 = vmatpush3.bf16.msra.mxu1 %v825_v29  ;;  %v107_v38 = vld [vmem:[%s1330_s4 + $0x238] sm:$0xff]  ;;  %v106_v40 = vld [vmem:[%s1330_s4 + $0x230] sm:$0xff]  ;;  %v105_v42 = vld [vmem:[%s1330_s4 + $0x228] sm:$0xff]  ;;  %s832_s26 = scalar_lea.vmem %s611_s25, 256  ;;  %p837_p1 = scmp.lt.s32.totalorder %s611_s25, %s611_s25 }
  0x2f   :  { %732 = vmatpush3.msra.mxu0 %v110_v32  ;;  %797 = vmatprep.subr.bf16.mxu1 %v878_v27  ;;  %v120_v43 = vld [vmem:[%s1330_s4 + $0x2a0] sm:$0xff]  ;;  %v119_v45 = vld [vmem:[%s1330_s4 + $0x298] sm:$0xff]  ;;  %v118_v47 = vld [vmem:[%s1330_s4 + $0x290] sm:$0xff]  ;;  %p833_p0 = scmp.ne.s32.totalorder %s611_s25, %s832_s26  ;;  %p838_p2 = scmp.lt.s32.totalorder %s832_s26, %s832_s26 }
  0x30   :  { %733 = vmatprep.subr.mxu0 %v125_v33  ;;  %v104_v44 = vld [vmem:[%s1330_s4 + $0x220] sm:$0xff]  ;;  %v103_v46 = vld [vmem:[%s1330_s4 + $0x218] sm:$0xff]  ;;  %v102_v48 = vld [vmem:[%s1330_s4 + $0x210] sm:$0xff] }
  0x31   :  { %734 = vmatpush3.msra.mxu0 %v109_v34  ;;  %v117_v49 = vld [vmem:[%s1330_s4 + $0x288] sm:$0xff]  ;;  %v116_v51 = vld [vmem:[%s1330_s4 + $0x280] sm:$0xff]  ;;  %v828_v55 = vld [vmem:[%s1329_s3 + $0x18] sm:$0xff]   ;;  %p839_p3 = por %p838_p2, %p837_p1 }
  0x32   :  { %735 = vmatprep.subr.mxu0 %v124_v35  ;;  %v101_v50 = vld [vmem:[%s1330_s4 + $0x208] sm:$0xff]  ;;  %v100_v52 = vld [vmem:[%s1330_s4 + $0x200] sm:$0xff]  ;;  %v390_v56 = vld [vmem:[%s1332_s6 + $0x38] sm:$0xff] }
  0x33   :  { %736 = vmatpush3.msra.mxu0 %v108_v36  ;;  %v826_v53 = vld [vmem:[%s1329_s3 + $0x28] sm:$0xff]   ;;  %v827_v54 = vld [vmem:[%s1329_s3 + $0x20] sm:$0xff]   ;;  %v389_v57 = vld [vmem:[%s1332_s6 + $0x30] sm:$0xff]  ;;  %p840_p4 = pnand %p839_p3, %p833_p0 }
  0x34   :  { %737 = vmatprep.subr.mxu0 %v123_v37  ;;  %798 = vmatpush3.bf16.msra.mxu1 %v826_v53  ;;  %v829_v58 = vld [vmem:[%s1329_s3 + $0x10] sm:$0xff]   ;;  %v388_v59 = vld [vmem:[%s1332_s6 + $0x28] sm:$0xff]  ;;  %v831_v61 = vld [vmem:[%s1329_s3] sm:$0xff]  }
  0x35   :  { %738 = vmatpush3.msra.mxu0 %v107_v38  ;;  %799 = vmatprep.subr.bf16.mxu1 %v878_v27  ;;  %v830_v60 = vld [vmem:[%s1329_s3 + $0x8] sm:$0xff]   ;;  %v387_v62 = vld [vmem:[%s1332_s6 + $0x20] sm:$0xff]  ;;  %v386_v63 = vld [vmem:[%s1332_s6 + $0x18] sm:$0xff] }
  0x36   :  { %739 = vmatprep.subr.mxu0 %v122_v39  ;;  %v385_v0 = vld [vmem:[%s1332_s6 + $0x10] sm:$0xff]  ;;  %v384_v1 = vld [vmem:[%s1332_s6 + $0x8] sm:$0xff]  ;;  %v383_v2 = vld [vmem:[%s1332_s6] sm:$0xff] }
  0x37   :  { %740 = vmatpush3.msra.mxu0 %v106_v40  ;;  %v635_v11 = vld [vmem:[%s1331_s5] ss:$0 sm:$0xff]  ;;  %v599_v26 = vld [vmem:[%s1328_s2 + $0x8] sm:$0xff] }
  0x38   :  { %741 = vmatprep.subr.mxu0 %v121_v41  ;;  %800 = vmatpush3.bf16.msra.mxu1 %v827_v54  ;;  %v598_v21 = vld [vmem:[%s1328_s2] sm:$0xff] }
  0x39   :  { %742 = vmatpush3.msra.mxu0 %v105_v42  ;;  %801 = vmatprep.subr.bf16.mxu1 %v878_v27 }
  0x3a   :  { %743 = vmatprep.subr.mxu0 %v120_v43 }
  0x3b   :  { %744 = vmatpush3.msra.mxu0 %v104_v44 }
  0x3c   :  { %745 = vmatprep.subr.mxu0 %v119_v45  ;;  %802 = vmatpush3.bf16.msra.mxu1 %v828_v55 }
  0x3d   :  { %746 = vmatpush3.msra.mxu0 %v103_v46  ;;  %803 = vmatprep.subr.bf16.mxu1 %v878_v27 }
  0x3e   :  { %747 = vmatprep.subr.mxu0 %v118_v47 }
  0x3f   :  { %748 = vmatpush3.msra.mxu0 %v102_v48 }
  0x40   :  { %749 = vmatprep.subr.mxu0 %v117_v49  ;;  %804 = vmatpush3.bf16.msra.mxu1 %v829_v58 }
  0x41   :  { %750 = vmatpush3.msra.mxu0 %v101_v50  ;;  %805 = vmatprep.subr.bf16.mxu1 %v878_v27 }
  0x42   :  { %751 = vmatprep.subr.mxu0 %v116_v51 }
  0x43   :  { %752 = vmatpush3.msra.mxu0 %v100_v52 }
  0x44   :  { %377 = vmatmul.mubr.f32.vlgmr.msra.gmra.mxu0 %v1146_v17  ;;  %774 = vmatprep.subr.mxu0 %v878_v27 }
  0x45   :  { %790 = vmatprep.mubr.msk.f32.mxu0 %vm879_vm0, %v878_v27  ;;  %775 = vmatpush3.msra.mxu0 %v390_v56 }
  0x46   :  { %776 = vmatprep.subr.mxu0 %v878_v27  ;;  %806 = vmatpush3.bf16.msra.mxu1 %v830_v60 }
  0x47   :  { %777 = vmatpush3.msra.mxu0 %v389_v57  ;;  %807 = vmatprep.subr.bf16.mxu1 %v878_v27 }
  0x48   :  { %778 = vmatprep.subr.mxu0 %v878_v27 }
  0x49   :  { %779 = vmatpush3.msra.mxu0 %v388_v59 }
  0x4a   :  { %780 = vmatprep.subr.mxu0 %v878_v27  ;;  %808 = vmatpush3.bf16.msra.mxu1 %v831_v61 }
  0x4b   :  { %781 = vmatpush3.msra.mxu0 %v387_v62 }
  0x4c   :  { %782 = vmatprep.subr.mxu0 %v878_v27 }
  0x4d   :  { %783 = vmatpush3.msra.mxu0 %v386_v63 }
  0x4e   :  { %784 = vmatprep.subr.mxu0 %v878_v27 }
  0x4f   :  { %785 = vmatpush3.msra.mxu0 %v385_v0 }
  0x50   :  { %786 = vmatprep.subr.mxu0 %v878_v27 }
  0x51   :  { %787 = vmatpush3.msra.mxu0 %v384_v1 }
  0x52   :  { %788 = vmatprep.subr.mxu0 %v878_v27 }
  0x53   :  { %789 = vmatpush3.msra.mxu0 %v383_v2 }
  0xa2   :  { %v480_v4 = vpop.permute.xlu0 %479 }
  0xa3   :  { %vm484_vm1 = vcmp.eq.s32.totalorder %v480_v4, %v477_v3 }
  0xa7   :  { %v483_v5 = vpop.permute.xlu0 %482 }
  0xa8   :  { %vm485_vm2 = vcmp.eq.s32.totalorder %v483_v5, %v477_v3 }
  0xa9   :  { %vm649_vm3 = vmpackc.low %vm485_vm2, %vm484_vm1 }
  0xaa   :  { %810 = vmatmul.mubr.msk.bf16.vlgmr.msra.gmra.mxu1 %vm649_vm3, %v880_v6 }
  0xe2   :  { %v683_v7 = vpop.f32.mrf.mxu0 }
  0xe4   :  { %v684_v8 = vpop.f32.mrf.mxu0 }
  0xe5   :  { %v718_v9 = vpop.f32.mrf.mxu1  ;;  %v685_v10 = vadd.f32 %v684_v8, %v683_v7 }
  0xe7   :  { %v719_v12 = vpop.f32.mrf.mxu1  ;;  %v239_v13 = vadd.f32 %v685_v10, %v635_v11 }
  0xe8   :  { %v720_v14 = vadd.f32 %v719_v12, %v718_v9 }
  0xea   :  { %v309_v16 = vadd.f32 %v720_v14, %v239_v13 }
 0x104   :  { %v753_v15 = vpop.f32.mrf.mxu0 }
 0x106   :  { %v754_v30 = vpop.f32.mrf.mxu0 }
 0x107   :  { %v755_v17 = vadd.f32 %v754_v30, %v753_v15 }
 0x109   :  { %v379_v18 = vadd.f32 %v755_v17, %v309_v16 }
 0x10b   :  { %v382_v19 = vmax.f32 %v379_v18, 0.0 }
 0x10d   :  { %791 = vmatmul.mubr.msk.f32.vlgmr.msra.gmra.mxu0 %vm398_vm4, %v382_v19 }
 0x16a   :  { %v589_v20 = vpop.f32.mrf.mxu1 }
 0x16b   :  { %v596_v22 = vmul.f32 5.656854, %v589_v20 }
 0x16c   :  { %v811_v23 = vpop.f32.mrf.mxu1 }
 0x16d   :  { %v600_v24 = vadd.f32 %v598_v21, %v596_v22 }
 0x16e   :  { %v592_v25 = vpop.f32.mrf.mxu1 }
 0x16f   :  { %603 = vst.msk [vmem:[#allocation2] sm:$0xff] %vm602_vm5, %v600_v24  ;;  %v597_v27 = vmul.f32 5.656854, %v592_v25 }
 0x170   :  { %v812_v28 = vpop.f32.mrf.mxu1 }
 0x171   :  { %v601_v29 = vadd.f32 %v599_v26, %v597_v27 }
 0x173   :  { %604 = vst.msk [vmem:[#allocation2 + $0x8] sm:$0xff] %vm602_vm5, %v601_v29 }
 0x174   :  { %843 = shalt.err (!%p840_p4)
}
 0x175   :  { %s882_s27 = smov 128   ;;  %s883_s28 = smov 8   ;;  %v637_v31 = vld [vmem:[%s1333_s7] ss:$0 sm:$0xff]  ;;  %vm472_vm6 = vcmask 254976  }
 0x176   :  { %616 = dma.vmem_to_hbm [thread:$0]  %s611_s25, 256, %s1334_s8, [#allocation3], %s882_s27, %s882_s27, %s883_s28  }
 0x177   :  { %s884_s10 = smov [#allocation4]  }
 0x178   :  { %s623_s11 = sshll.u32 %s884_s10, 4  ;;  %s624_s11 = int_to_ptr.vmem [resolvable:$true] %s623_s11 }
 0x179   :  { %s852_s12 = scalar_lea.vmem %s624_s11, 32  ;;  %p857_p6 = scmp.lt.s32.totalorder %s624_s11, %s624_s11 }
 0x17a   :  { %p853_p5 = scmp.ne.s32.totalorder %s624_s11, %s852_s12  ;;  %p858_p7 = scmp.lt.s32.totalorder %s852_s12, %s852_s12 }
 0x17c   :  { %p859_p8 = por %p858_p7, %p857_p6 }
 0x17e   :  { %p860_p9 = pnand %p859_p8, %p853_p5 }
 0x1cd   :  { %v468_v32 = vpop.f32.mrf.mxu0 }
 0x1ce   :  { %v469_v33 = vadd.f32 %v637_v31, %v468_v32 }
 0x1cf   :  { %v792_v34 = vpop.f32.mrf.mxu0 }
 0x1d0   :  { %473 = vst.msk [vmem:[#allocation4] sm:$0x3] %vm472_vm6, %v469_v33 }
 0x1d1   :  { %863 = shalt.err (!%p860_p9)
}
 0x1d2   :  { %626 = dma.vmem_to_hbm [thread:$0]  %s624_s11, 32, %s1335_s9, [#allocation5]  }
 0x1d3   :  { %872 = dma.done.wait [#allocation3], 256  }
 0x1d4   :  { %873 = vsyncadd [#allocation3], 4294967040 }
 0x1d5   :  { %874 = dma.done.wait [#allocation5], 32  }
 0x1d6   :  { %875 = vsyncadd [#allocation5], 4294967264 }
 0x1d7   :  { %633 = vsyncpa [#allocation3], 1 }
 0x1d8   :  { %634 = vsyncpa [#allocation5], 1 }

</bundles_post_ra>
